<compile_context>
chip_gen: v6e
topology: v6e:2x2x1
jax: 0.10.0
libtpu: 0.0.40
codegen_flags: <defaults>
</compile_context>

<pallas_src>
import functools

import jax
import jax.numpy as jnp
from jax.experimental import pallas as pl
from jax.experimental.pallas import tpu as pltpu

_NEG_SLOPE = 0.2
_EPS = 1e-5


def _cdiv(a, b):
    return -(-a // b)


def _round_up(a, b):
    return _cdiv(a, b) * b


def _vmem_capacity_bytes():
    try:
        return int(pltpu.get_tpu_info().vmem_capacity_bytes)
    except Exception:
        return 64 * 1024 * 1024  # assume v7x (smallest VMEM) if the query fails


def _num_tensorcores():
    try:
        info = pltpu.get_tpu_info()
        for attr in ("num_cores", "core_count", "num_tensorcores"):
            v = getattr(info, attr, None)
            if v:
                return int(v)
    except Exception:
        pass
    try:
        return int(getattr(jax.devices()[0], "num_cores", 1)) or 1
    except Exception:
        return 1


# ----------------------------------------------------------------------------
# Kernel bodies
# ----------------------------------------------------------------------------

def _instnorm_lrelu(y, *, inv_p, p_valid, p_padded):
    """InstanceNorm(affine=False) + LeakyReLU on a resident (tc, Ppad) f32 tile.

    Two-pass centered variance (mean first, then sum((y-mean)^2)) for accuracy.
    Padded P columns (which hold exact zeros of y) are masked out of the
    variance sum so the statistics use the true spatial extent only.
    """
    mean = jnp.sum(y, axis=1, keepdims=True) * inv_p
    yc = y - mean
    if p_padded:
        col = jax.lax.broadcasted_iota(jnp.int32, yc.shape, 1)
        yc_sq = jnp.where(col < p_valid, yc, 0.0)
    else:
        yc_sq = yc
    var = jnp.sum(yc_sq * yc_sq, axis=1, keepdims=True) * inv_p
    yn = yc * jax.lax.rsqrt(var + _EPS)
    return jnp.where(yn > 0, yn, _NEG_SLOPE * yn)


def _fused_kernel_single_k(x_ref, w_ref, o_ref, *, inv_p, p_valid, p_padded):
    # x_ref: (1, K, Pp) bf16 im2col patches; w_ref: (tc, K) bf16; o_ref: (1, tc, Pp)
    y = jnp.dot(w_ref[...], x_ref[0], preferred_element_type=jnp.float32)
    o_ref[0] = _instnorm_lrelu(
        y, inv_p=inv_p, p_valid=p_valid, p_padded=p_padded).astype(o_ref.dtype)


def _fused_kernel_multi_k(x_ref, w_ref, o_ref, acc_ref, *, inv_p, p_valid, p_padded):
    # x_ref: (1, tk, Pp) bf16; w_ref: (tc, tk) bf16; o_ref: (1, tc, Pp);
    # acc_ref: (tc, Pp) f32 accumulator (resident across the K grid axis).
    k = pl.program_id(2)

    @pl.when(k == 0)
    def _():
        acc_ref[...] = jnp.zeros_like(acc_ref)

    acc_ref[...] += jnp.dot(w_ref[...], x_ref[0], preferred_element_type=jnp.float32)

    @pl.when(k == pl.num_programs(2) - 1)
    def _():
        o_ref[0] = _instnorm_lrelu(
            acc_ref[...], inv_p=inv_p, p_valid=p_valid,
            p_padded=p_padded).astype(o_ref.dtype)


def _conv_stats_kernel(x_ref, w_ref, y_ref, s1_ref, s2_ref, acc_ref):
    # Fallback phase A.  grid = (c, n, p, k).
    # x_ref (1, tk, tp); w_ref (tc, tk); y_ref (1, tc, tp) f32;
    # s1/s2 (1, tc, 1) f32 (resident across p & k); acc_ref (tc, tp) f32.
    p = pl.program_id(2)
    k = pl.program_id(3)

    @pl.when(k == 0)
    def _():
        acc_ref[...] = jnp.zeros_like(acc_ref)

    acc_ref[...] += jnp.dot(w_ref[...], x_ref[0], preferred_element_type=jnp.float32)

    @pl.when(k == pl.num_programs(3) - 1)
    def _():
        y = acc_ref[...]
        y_ref[0] = y.astype(y_ref.dtype)
        # Padded P columns are exact zeros, so plain sums over the tile are exact.
        ps1 = jnp.sum(y, axis=1, keepdims=True)
        ps2 = jnp.sum(y * y, axis=1, keepdims=True)

        @pl.when(p == 0)
        def _():
            s1_ref[0] = ps1
            s2_ref[0] = ps2

        @pl.when(p > 0)
        def _():
            s1_ref[0] += ps1
            s2_ref[0] += ps2


def _norm_lrelu_kernel(y_ref, mean_ref, istd_ref, o_ref):
    # Fallback phase B.  y_ref (1, tc, tp) f32; mean/istd (1, tc, 1); o (1, tc, tp).
    yn = (y_ref[0] - mean_ref[0]) * istd_ref[0]
    o_ref[0] = jnp.where(yn > 0, yn, _NEG_SLOPE * yn).astype(o_ref.dtype)


# ----------------------------------------------------------------------------
# Tile selection
# ----------------------------------------------------------------------------

def _select_fused_tiles(cout8, k_dim, p_pad, out_bytes, budget):
    """Pick (tc, tk) for the full-P-resident fused path, or None if it can't fit.

    Preference order: tc as large as possible (avoid re-streaming the patch
    slab across Cout tiles), then tk as large as possible (fewer reduction
    steps).
    """
    tc_cands = []
    for c in (cout8, 512, 256, 128, 64, 32, 16):
        if c <= cout8 and c not in tc_cands:
            tc_cands.append(c)
    if not tc_cands:
        tc_cands = [cout8]
    tk_cands = [k_dim] + [t for t in (2048, 1024, 512, 256, 128) if t < k_dim]
    for tc in tc_cands:
        for tk in tk_cands:
            vmem = (2 * tk * p_pad * 2            # x block, double-buffered, bf16
                    + 2 * tc * tk * 2             # w block, double-buffered, bf16
                    + 2 * tc * p_pad * out_bytes  # out block, double-buffered
                    + 3 * tc * p_pad * 4)         # acc + epilogue temporaries (f32)
            if vmem <= budget:
                return tc, tk
    return None


def _select_split_tiles(cout8, k_dim, p128, budget):
    """Pick (tc, tk, tp) for the P-tiled two-kernel fallback path."""
    tc = min(cout8, 128)
    tk = k_dim if k_dim <= 512 else 512
    tp_cands = [t for t in (4096, 2048, 1024, 512, 256, 128) if t <= p128] or [p128]
    for tp in tp_cands:
        vmem = (2 * tk * tp * 2 + 2 * tc * tk * 2 + 2 * tc * tp * 4
                + 3 * tc * tp * 4 + 1024)
        if vmem <= budget:
            return tc, tk, tp
    return min(cout8, 64), min(k_dim, 256), 128


# ----------------------------------------------------------------------------
# Wrapper
# ----------------------------------------------------------------------------

def down_forward(x, weight, bias, *, force_split=False, _force_fused_tiles=None):
    """x: (N, Cin, H, W); weight: (Cout, Cin, 4, 4); bias: (Cout,) -> (N, Cout, H//2, W//2).

    `bias` is accepted for API parity with the PyTorch module but is unused:
    InstanceNorm2d(affine=False) exactly cancels a per-channel constant bias.
    """
    del bias
    N, Cin, H, W = x.shape
    Cout = weight.shape[0]
    kh = kw = 4
    stride, pad = 2, 1
    Ho = (H + 2 * pad - kh) // stride + 1
    Wo = (W + 2 * pad - kw) // stride + 1
    P = Ho * Wo
    K = Cin * kh * kw
    out_dtype = x.dtype
    out_bytes = jnp.dtype(out_dtype).itemsize

    # --- im2col directly in (N, K, P) layout, built in bf16 (cast BEFORE the
    # gather so the intermediate costs half the HBM traffic of f32).
    # TODO(synk): fuse this gather into the kernel to remove the patch blowup.
    xb = x.astype(jnp.bfloat16)
    xp = jnp.pad(xb, ((0, 0), (0, 0), (pad, pad), (pad, pad)))
    taps = [xp[:, :, i:i + stride * Ho:stride, j:j + stride * Wo:stride]
            for i in range(kh) for j in range(kw)]
    patch = jnp.stack(taps, axis=2).reshape(N, K, P)       # K index = ci*16 + i*4 + j
    w_mat = weight.reshape(Cout, K).astype(jnp.bfloat16)   # matches OIHW flatten

    cout8 = _round_up(Cout, 8)
    p128 = _round_up(P, 128)   # lane-dense output (unmasked vst)

    cap = _vmem_capacity_bytes()
    vmem_limit = int(min(cap * 5 // 8, 100 * 1024 * 1024))  # ~40 MiB v7x, 80 MiB v5e/v6e
    budget = int(vmem_limit * 0.8)

    fused = None if force_split else (
        _force_fused_tiles if _force_fused_tiles is not None
        else _select_fused_tiles(cout8, K, p128, out_bytes, budget))

    # ------------------------------------------------------------------ fused
    if fused is not None:
        tc, tk = fused
        if tc < cout8:
            # Balance Cout tiles to minimize zero-padding waste.
            tc = _round_up(_cdiv(cout8, _cdiv(cout8, tc)), 16)
        elif N == 1 and cout8 >= 32 and _num_tensorcores() >= 2:
            # Guarantee a parallel grid axis so both v7x TensorCores get work.
            tc = _round_up(_cdiv(cout8, 2), 16)
        if tk < K:
            tk = _round_up(_cdiv(K, _cdiv(K, tk)), 16)
        coutp = _round_up(cout8, tc)
        kp = _round_up(K, tk)

        pat = jnp.pad(patch, ((0, 0), (0, kp - K), (0, p128 - P)))
        wm = jnp.pad(w_mat, ((0, coutp - Cout), (0, kp - K)))

        n_ct, n_kt = coutp // tc, kp // tk
        single_k = (n_kt == 1)
        kern_kw = dict(inv_p=float(1.0 / P), p_valid=P, p_padded=(p128 != P))

        # Honest cost estimate (includes Cout-tile re-streaming of the patch slab).
        x_rd = n_ct * N * kp * p128 * 2
        w_rd = (coutp * kp * 2) if single_k else (N * coutp * kp * 2)
        o_wr = N * coutp * p128 * out_bytes
        cost = pl.CostEstimate(
            flops=int(2 * N * coutp * kp * p128 + 8 * N * coutp * p128),
            transcendentals=int(N * coutp),
            bytes_accessed=int(x_rd + w_rd + o_wr))

        if single_k:
            kernel = functools.partial(_fused_kernel_single_k, **kern_kw)
            grid = (n_ct, N)
            in_specs = [pl.BlockSpec((1, kp, p128), lambda c, n: (n, 0, 0)),
                        pl.BlockSpec((tc, kp), lambda c, n: (c, 0))]
            out_spec = pl.BlockSpec((1, tc, p128), lambda c, n: (n, c, 0))
            scratch = ()
            dims = ("parallel", "parallel")
        else:
            kernel = functools.partial(_fused_kernel_multi_k, **kern_kw)
            grid = (n_ct, N, n_kt)
            in_specs = [pl.BlockSpec((1, tk, p128), lambda c, n, k: (n, k, 0)),
                        pl.BlockSpec((tc, tk), lambda c, n, k: (c, k))]
            out_spec = pl.BlockSpec((1, tc, p128), lambda c, n, k: (n, c, 0))
            scratch = (pltpu.VMEM((tc, p128), jnp.float32),)
            dims = ("parallel", "parallel", "arbitrary")

        out = pl.pallas_call(
            kernel,
            out_shape=jax.ShapeDtypeStruct((N, coutp, p128), out_dtype),
            grid_spec=pltpu.PrefetchScalarGridSpec(
                num_scalar_prefetch=0,
                grid=grid,
                in_specs=in_specs,
                out_specs=out_spec,
                scratch_shapes=scratch),
            compiler_params=pltpu.CompilerParams(
                dimension_semantics=dims,
                vmem_limit_bytes=vmem_limit),
            cost_estimate=cost,
        )(pat, wm)

        return out[:, :Cout, :P].reshape(N, Cout, Ho, Wo)

    # --------------------------------------------------------------- fallback
    # P-tiled two-kernel path for shapes whose full spatial extent cannot stay
    # resident in VMEM (e.g. large images on v7x's 64 MiB VMEM).
    tc, tk, tp = _select_split_tiles(cout8, K, p128, budget)
    if tc < cout8:
        tc = _round_up(_cdiv(cout8, _cdiv(cout8, tc)), 16)
    if tk < K:
        tk = _round_up(_cdiv(K, _cdiv(K, tk)), 16)
    if tp < p128:
        tp = _round_up(_cdiv(p128, _cdiv(p128, tp)), 128)
    coutp = _round_up(cout8, tc)
    kp = _round_up(K, tk)
    pp = _round_up(p128, tp)

    pat = jnp.pad(patch, ((0, 0), (0, kp - K), (0, pp - P)))
    wm = jnp.pad(w_mat, ((0, coutp - Cout), (0, kp - K)))
    n_ct, n_kt, n_pt = coutp // tc, kp // tk, pp // tp

    y, s1, s2 = pl.pallas_call(
        _conv_stats_kernel,
        out_shape=(jax.ShapeDtypeStruct((N, coutp, pp), jnp.float32),
                   jax.ShapeDtypeStruct((N, coutp, 1), jnp.float32),
                   jax.ShapeDtypeStruct((N, coutp, 1), jnp.float32)),
        grid_spec=pltpu.PrefetchScalarGridSpec(
            num_scalar_prefetch=0,
            grid=(n_ct, N, n_pt, n_kt),
            in_specs=[pl.BlockSpec((1, tk, tp), lambda c, n, p, k: (n, k, p)),
                      pl.BlockSpec((tc, tk), lambda c, n, p, k: (c, k))],
            out_specs=[pl.BlockSpec((1, tc, tp), lambda c, n, p, k: (n, c, p)),
                       pl.BlockSpec((1, tc, 1), lambda c, n, p, k: (n, c, 0)),
                       pl.BlockSpec((1, tc, 1), lambda c, n, p, k: (n, c, 0))],
            scratch_shapes=(pltpu.VMEM((tc, tp), jnp.float32),)),
        compiler_params=pltpu.CompilerParams(
            dimension_semantics=("parallel", "parallel", "arbitrary", "arbitrary"),
            vmem_limit_bytes=vmem_limit),
    )(pat, wm)

    # Tiny per-(n, channel) finalize (one-pass formula, guarded).
    mean = s1 * (1.0 / P)
    var = jnp.maximum(s2 * (1.0 / P) - mean * mean, 0.0)
    istd = jax.lax.rsqrt(var + _EPS)

    out = pl.pallas_call(
        _norm_lrelu_kernel,
        out_shape=jax.ShapeDtypeStruct((N, coutp, pp), out_dtype),
        grid_spec=pltpu.PrefetchScalarGridSpec(
            num_scalar_prefetch=0,
            grid=(n_ct, N, n_pt),
            in_specs=[pl.BlockSpec((1, tc, tp), lambda c, n, p: (n, c, p)),
                      pl.BlockSpec((1, tc, 1), lambda c, n, p: (n, c, 0)),
                      pl.BlockSpec((1, tc, 1), lambda c, n, p: (n, c, 0))],
            out_specs=pl.BlockSpec((1, tc, tp), lambda c, n, p: (n, c, p))),
        compiler_params=pltpu.CompilerParams(
            dimension_semantics=("parallel", "parallel", "parallel"),
            vmem_limit_bytes=vmem_limit),
    )(y, mean, istd)

    return out[:, :Cout, :P].reshape(N, Cout, Ho, Wo)


# ----------------------------------------------------------------------------
# Reference + self-test
# ----------------------------------------------------------------------------

def _reference(x, weight, bias):
    y = jax.lax.conv_general_dilated(
        x, weight, window_strides=(2, 2), padding=((1, 1), (1, 1)),
        dimension_numbers=("NCHW", "OIHW", "NCHW"))
    y = y + bias[None, :, None, None]
    mean = jnp.mean(y, axis=(2, 3), keepdims=True)
    var = jnp.mean((y - mean) ** 2, axis=(2, 3), keepdims=True)
    yn = (y - mean) * jax.lax.rsqrt(var + _EPS)
    return jnp.where(yn > 0, yn, _NEG_SLOPE * yn)


if __name__ == "__main__":
    key = jax.random.PRNGKey(0)
    k_x, k_w, k_b = jax.random.split(key, 3)

    N, in_ch, out_ch, H, W = 2, 4, 8, 16, 16

    x = jax.random.normal(k_x, (N, in_ch, H, W), dtype=jnp.float32)
    # Deterministic synthetic parameters (Conv2d(in_ch, out_ch, 4, stride=2, padding=1)).
    fan_in = in_ch * 4 * 4
    bound = 1.0 / (fan_in ** 0.5)
    weight = jax.random.uniform(k_w, (out_ch, in_ch, 4, 4), jnp.float32, -bound, bound)
    bias = jax.random.uniform(k_b, (out_ch,), jnp.float32, -bound, bound)

    ref = jax.block_until_ready(_reference(x, weight, bias))

    # 1) Fused single-K-step path (the common case).
    out = jax.block_until_ready(jax.jit(down_forward)(x, weight, bias))
    assert out.shape == (N, out_ch, H // 2, W // 2), out.shape
    assert jnp.allclose(out, ref, atol=2e-2, rtol=2e-2), float(jnp.max(jnp.abs(out - ref)))

    # 2) Fused multi-K-step path (forced small K tile to exercise the accumulator).
    out_mk = jax.block_until_ready(
        jax.jit(functools.partial(down_forward, _force_fused_tiles=(8, 32)))(x, weight, bias))
    assert jnp.allclose(out_mk, ref, atol=2e-2, rtol=2e-2), float(jnp.max(jnp.abs(out_mk - ref)))

    # 3) P-tiled two-kernel fallback path (used for large spatial extents on v7x).
    out_sp = jax.block_until_ready(
        jax.jit(functools.partial(down_forward, force_split=True))(x, weight, bias))
    assert jnp.allclose(out_sp, ref, atol=2e-2, rtol=2e-2), float(jnp.max(jnp.abs(out_sp - ref)))

    print("KERNEL_OK")
</pallas_src>

<mosaic_0001>
module attributes {stable_mosaic.version = 11 : i64} {
  func.func @_fused_kernel_single_k(%arg0: i32, %arg1: i32, %arg2: memref<1x64x128xbf16, #tpu.memory_space<vmem>>, %arg3: memref<8x64xbf16, #tpu.memory_space<vmem>>, %arg4: memref<1x8x128xf32, #tpu.memory_space<vmem>>) attributes {dimension_semantics = [#tpu.dimension_semantics<parallel>, #tpu.dimension_semantics<parallel>], iteration_bounds = array<i64: 1, 2>, scalar_prefetch = 0 : i64, scratch_operands = 0 : i64, tpu.core_type = #tpu.core_type<tc>, window_params = [{transform_indices = @transform_0, window_bounds = array<i64: 1, 64, 128>}, {transform_indices = @transform_1, window_bounds = array<i64: 8, 64>}, {transform_indices = @transform_2, window_bounds = array<i64: 1, 8, 128>}]} {
    %c0 = arith.constant 0 : index
    %c0_0 = arith.constant 0 : index
    %0 = vector.load %arg3[%c0, %c0_0] : memref<8x64xbf16, #tpu.memory_space<vmem>>, vector<8x64xbf16>
    %c0_1 = arith.constant 0 : index
    %c0_2 = arith.constant 0 : index
    %c0_3 = arith.constant 0 : index
    %1 = vector.load %arg2[%c0_1, %c0_2, %c0_3] : memref<1x64x128xbf16, #tpu.memory_space<vmem>>, vector<1x64x128xbf16>
    %2 = vector.shape_cast %1 : vector<1x64x128xbf16> to vector<64x128xbf16>
    %cst = arith.constant dense<0.000000e+00> : vector<8x128xf32>
    %3 = tpu.matmul %0, %2, %cst {dimension_numbers = #tpu.dot_dimension_numbers<[1], [0], [0], [1], [0, 0, 1, 1], [], []>} : vector<8x64xbf16>, vector<64x128xbf16>, vector<8x128xf32> -> vector<8x128xf32>
    %cst_4 = arith.constant dense<0.000000e+00> : vector<8xf32>
    %4 = vector.multi_reduction <add>, %3, %cst_4 [1] : vector<8x128xf32> to vector<8xf32>
    %5 = vector.shape_cast %4 : vector<8xf32> to vector<8x1xf32>
    %cst_5 = arith.constant 1.562500e-02 : f32
    %6 = vector.broadcast %cst_5 : f32 to vector<8x1xf32>
    %7 = arith.mulf %5, %6 : vector<8x1xf32>
    %8 = vector.broadcast %7 : vector<8x1xf32> to vector<8x128xf32>
    %9 = arith.subf %3, %8 : vector<8x128xf32>
    %10 = tpu.iota {dimensions = array<i32: 1>} : vector<8x128xi32>
    %c64_i32 = arith.constant 64 : i32
    %11 = vector.broadcast %c64_i32 : i32 to vector<8x128xi32>
    %12 = arith.cmpi slt, %10, %11 : vector<8x128xi32>
    %cst_6 = arith.constant 0.000000e+00 : f32
    %13 = vector.broadcast %cst_6 : f32 to vector<8x128xf32>
    %14 = arith.select %12, %9, %13 : vector<8x128xi1>, vector<8x128xf32>
    %15 = arith.mulf %14, %14 : vector<8x128xf32>
    %cst_7 = arith.constant dense<0.000000e+00> : vector<8xf32>
    %16 = vector.multi_reduction <add>, %15, %cst_7 [1] : vector<8x128xf32> to vector<8xf32>
    %17 = vector.shape_cast %16 : vector<8xf32> to vector<8x1xf32>
    %cst_8 = arith.constant 1.562500e-02 : f32
    %18 = vector.broadcast %cst_8 : f32 to vector<8x1xf32>
    %19 = arith.mulf %17, %18 : vector<8x1xf32>
    %cst_9 = arith.constant 9.99999974E-6 : f32
    %20 = vector.broadcast %cst_9 : f32 to vector<8x1xf32>
    %21 = arith.addf %19, %20 : vector<8x1xf32>
    %22 = math.rsqrt %21 : vector<8x1xf32>
    %23 = vector.broadcast %22 : vector<8x1xf32> to vector<8x128xf32>
    %24 = arith.mulf %9, %23 : vector<8x128xf32>
    %cst_10 = arith.constant 0.000000e+00 : f32
    %25 = vector.broadcast %cst_10 : f32 to vector<8x128xf32>
    %26 = arith.cmpf ogt, %24, %25 : vector<8x128xf32>
    %cst_11 = arith.constant 2.000000e-01 : f32
    %27 = vector.broadcast %cst_11 : f32 to vector<8x128xf32>
    %28 = arith.mulf %27, %24 : vector<8x128xf32>
    %29 = arith.select %26, %24, %28 : vector<8x128xi1>, vector<8x128xf32>
    %c0_12 = arith.constant 0 : index
    %c0_13 = arith.constant 0 : index
    %c0_14 = arith.constant 0 : index
    %30 = vector.load %arg4[%c0_12, %c0_13, %c0_14] : memref<1x8x128xf32, #tpu.memory_space<vmem>>, vector<1x8x128xf32>
    %31 = vector.shape_cast %30 : vector<1x8x128xf32> to vector<8x128xf32>
    %32 = vector.shape_cast %29 : vector<8x128xf32> to vector<1x8x128xf32>
    tpu.vector_store %arg4[%c0_12, %c0_13, %c0_14], %32 {strides = array<i32>} : memref<1x8x128xf32, #tpu.memory_space<vmem>>, vector<1x8x128xf32>,
    return
  }
  func.func @transform_0(%arg0: i32, %arg1: i32) -> (i32, i32, i32) {
    %c0_i32 = arith.constant 0 : i32
    %c0_i32_0 = arith.constant 0 : i32
    %c0_i32_1 = arith.constant 0 : i32
    return %arg1, %c0_i32, %c0_i32_0 : i32, i32, i32
  }
  func.func @transform_1(%arg0: i32, %arg1: i32) -> (i32, i32) {
    %c0_i32 = arith.constant 0 : i32
    %c0_i32_0 = arith.constant 0 : i32
    return %arg0, %c0_i32 : i32, i32
  }
  func.func @transform_2(%arg0: i32, %arg1: i32) -> (i32, i32, i32) {
    %c0_i32 = arith.constant 0 : i32
    %c0_i32_0 = arith.constant 0 : i32
    return %arg1, %arg0, %c0_i32 : i32, i32, i32
  }
}

</mosaic_0001>

<bundles_post_ra>
// kernel: down_forward.1
= control target key start
LH: loop header
LB: loop body
LE: loop exit
PB: predicated region body
PF: predicated region fallthrough
CT: control target
= control target key end

     0   :  { %s470_s9 = smov 0   ;;  %s472_s10 = smov 0   ;;  %s510_s0 = inlined_call_operand.vmem [shape: bf16[2,64,128], index: 0, kind: input, shape index: {}]   ;;  %s511_s1 = inlined_call_operand.vmem [shape: bf16[8,64], index: 1, kind: input, shape index: {}]   ;;  %s512_s2 = inlined_call_operand.vmem [shape: f32[2,8,128], index: 2, kind: output, shape index: {}]  }
   0x1   :  { %s474_s11 = smov 0  }
   0x2 LB: > { %s21_s12 = sadd.s32 1, %s447_s10  ;;  %p368_p0 = scmp.ge.s32.totalorder %s451_s11, 1  ;;  %s451_s11 = sphi %s474_s11, %s12_s11   ;;  %s447_s10 = sphi %s472_s10, %s514_s10   ;;  %s443_s9 = sphi %s470_s9, %s513_s9  }
   0x3   : > { %p22_p1 = scmp.ge.s32.totalorder %s21_s12, 2  ;;  %p135_p2 = scmp.lt.s32.totalorder %s451_s11, 3 }
   0x5   : > { %s516_s12 = smov (%p22_p1, %s21_s12), 0  ;;  %p136_p3 = pnand %p368_p0, %p135_p2 }
   0x6   : > { %p163_p4 = scmp.lt.s32.totalorder (!%p136_p3), %s443_s9, 1 }
   0x7   : > { %139 = sbr.rel (%p136_p3) target bundleno = 531 (0x213), region = 28 }
   0xc   : > { %v453_v0 = vmov 0.0   ;;  %vm454_vm0 = vmmov 0   ;;  %s518_s9 = smov (!%p163_p4, %s443_s9), 1  ;;  %v180_v5 = vld [vmem:[%s511_s1] sm:$0xf]  ;;  %vm213_vm1 = vcmask 523264   ;;  %v261_v10 = vlaneseq }
   0xd   : > { %385 = vmatprep.subr.bf16.mxu0 %v453_v0  ;;  %393 = vmatprep.mubr.msk.bf16.mxu0 %vm454_vm0, %v453_v0  ;;  %s379_s13 = sshll.u32 %s518_s9, 5  ;;  %s371_s19 = sshll.u32 %s518_s9, 3 }
   0xe   : > { %s167_s16 = scalar_lea.vmem %s510_s0, %s379_s13  ;;  %v262_v11 = vand.u32 127, %v261_v10  ;;  %s178_s22 = scalar_lea.vmem %s512_s2, %s371_s19 }
   0xf   : > { %v423_v1 = vld [vmem:[%s167_s16 + $0x18] sm:$0xff]   ;;  %v424_v2 = vld [vmem:[%s167_s16 + $0x10] sm:$0xff]   ;;  %v425_v3 = vld [vmem:[%s167_s16 + $0x8] sm:$0xff]  }
  0x10   : > { %386 = vmatpush3.bf16.msra.mxu0 %v423_v1  ;;  %v426_v4 = vld [vmem:[%s167_s16] sm:$0xff]   ;;  %vm263_vm2 = vcmp.lt.s32.totalorder %v262_v11, 64 }
  0x11   : > { %387 = vmatprep.subr.bf16.mxu0 %v453_v0 }
  0x14   : > { %388 = vmatpush3.bf16.msra.mxu0 %v424_v2 }
  0x15   : > { %389 = vmatprep.subr.bf16.mxu0 %v453_v0 }
  0x18   : > { %390 = vmatpush3.bf16.msra.mxu0 %v425_v3 }
  0x19   : > { %391 = vmatprep.subr.bf16.mxu0 %v453_v0 }
  0x1c   : > { %392 = vmatpush3.bf16.msra.mxu0 %v426_v4 }
  0x1f   : > { %394 = vmatmul.mubr.msk.bf16.vlgmr.msra.gmra.mxu0 %vm213_vm1, %v180_v5 }
  0xdf   : > { %v251_v6 = vpop.f32.mrf.mxu0 }
  0xe0   : > { %257 = vadd.xlane.f32.xlu0 %v251_v6 }
  0xe1   : > { %v395_v7 = vpop.f32.mrf.mxu0 }
  0xe3   : > { %v254_v8 = vpop.f32.mrf.mxu0 }
  0xe5   : > { %v396_v9 = vpop.f32.mrf.mxu0 }
 0x169   : > { %v258_v12 = vpop.xlane.xlu0 %257 }
 0x16a   : > { %v259_v13 = vmul.f32 0.015625, %v258_v12 }
 0x16c   : > { %v260_v14 = vsub.f32 %v251_v6, %v259_v13 }
 0x16e   : > { %v264_v15 = vsel %vm263_vm2, %v260_v14, 0.0 }
 0x16f   : > { %v265_v16 = vmul.f32 %v264_v15, %v264_v15 }
 0x171   : > { %266 = vadd.xlane.f32.xlu0 %v265_v16 }
 0x1fa   : > { %v267_v17 = vpop.xlane.xlu0 %266 }
 0x1fb   : > { %v268_v18 = vmul.f32 0.015625, %v267_v17 }
 0x1fd   : > { %v269_v19 = vadd.f32 1e-05, %v268_v18 }
 0x1ff   : > { %427 = vrsqrt.f32 %v269_v19 }
 0x20c   : > { %v428_v20 = vpop.eup %427 }
 0x20d   : > { %v271_v21 = vmul.f32 %v428_v20, %v260_v14 }
 0x20f   : > { %vm272_vm3 = vcmp.gt.f32.partialorder %v271_v21, 0.0  ;;  %v273_v22 = vmul.f32 0.2, %v271_v21 }
 0x211   : > { %v274_v23 = vsel %vm272_vm3, %v271_v21, %v273_v22 }
 0x212   : > { %275 = vst [vmem:[%s178_s22] sm:$0xff] %v274_v23 }
 0x213 PF: > { %s12_s11 = sadd.s32 1, %s451_s11   ;;  %s513_s9 = smov %s447_s10 }
 0x214   : > { %p9_p5 = scmp.ge.s32.totalorder %s12_s11, 4   ;;  %s514_s10 = smov %s516_s12 }
 0x216   :  { %11 = sbr.rel (!%p9_p5) target bundleno = 2 (0x2), region = 61 }

</bundles_post_ra>
